<compile_context>
chip_gen: v5e
topology: v5e:2x2
jax: 0.10.0
libtpu: 0.0.40
codegen_flags: <defaults>
</compile_context>

<pallas_src>
import jax
import jax.numpy as jnp
from jax.experimental import pallas as pl
from jax.experimental.pallas import tpu as pltpu


# ----------------------------- small helpers --------------------------------
def _round_up(n: int, m: int) -> int:
    return ((n + m - 1) // m) * m


def _cdiv(a: int, b: int) -> int:
    return (a + b - 1) // b


def _choose_batch_tile(batch: int, block_b: int) -> int:
    """Sublane-aligned batch tile that minimises padding; gives the 'parallel'
    batch axis >= 2 steps once there is enough work (v7x has two TensorCores;
    v5e/v6e simply run the steps back-to-back)."""
    b8 = _round_up(max(batch, 1), 8)
    n_steps = _cdiv(b8, max(block_b, 8))
    if b8 >= 512:
        n_steps = max(n_steps, 2)
    return _round_up(_cdiv(b8, n_steps), 8)


def _vmem_limit_bytes(tb: int, d_in: int, h_dim: int, out_cols: int,
                      weight_bytes: int) -> int:
    """Double-buffered streaming tiles + weights + live hidden tile, with 2x
    headroom; floor 16 MiB, cap 64 MiB (v7x physical VMEM)."""
    tile = 4 * tb * (d_in + h_dim + out_cols)
    need = 2 * weight_bytes + 2 * tile
    return int(min(64 << 20, max(16 << 20, 2 * need)))


# -------------------------------- kernels ------------------------------------
def _mlp_kernel_dout1(x_ref, w1_ref, b1_ref, w2r_ref, b2_ref, o_ref):
    """Fused MLP, D_out == 1 (reward head) fast path.

    x_ref  : (tb, D_in)  f32  streamed batch tile
    w1_ref : (D_in, H)   f32  VMEM-resident
    b1_ref : (1, H)      f32
    w2r_ref: (1, H)      f32  (w2 column laid out as a row)
    b2_ref : (1, 1)      f32  SMEM scalar
    o_ref  : (tb, 1)     output dtype
    """
    h = jnp.dot(x_ref[...], w1_ref[...], preferred_element_type=jnp.float32)  # MXU
    h = jnp.maximum(h + b1_ref[...], 0.0)                                     # VPU
    # Layer 2: VPU multiply + XLU lane reduction (cheaper than an N=1 matmul).
    y = jnp.sum(h * w2r_ref[...], axis=-1, keepdims=True) + b2_ref[0, 0]
    o_ref[...] = y.astype(o_ref.dtype)


def _mlp_kernel_wide(x_ref, w1_ref, b1_ref, w2_ref, b2_ref, o_ref):
    """Generic D_out > 1 path: both layers on the MXU (f32 accumulation)."""
    h = jnp.dot(x_ref[...], w1_ref[...], preferred_element_type=jnp.float32)
    h = jnp.maximum(h + b1_ref[...], 0.0)
    y = jnp.dot(h, w2_ref[...], preferred_element_type=jnp.float32)
    o_ref[...] = (y + b2_ref[...]).astype(o_ref.dtype)


# ------------------------------- wrappers ------------------------------------
def prepare_params(w1, b1, w2, b2):
    """One-time parameter prep (reshape/cast). Call once; reuse every forward."""
    d_in, h_dim = w1.shape
    h2, d_out = w2.shape
    assert h2 == h_dim
    params = {
        "d_in": d_in,
        "h": h_dim,
        "d_out": d_out,
        "w1": w1.astype(jnp.float32),
        "b1": jnp.reshape(b1, (1, h_dim)).astype(jnp.float32),
        "b2": jnp.reshape(b2, (1, d_out)).astype(jnp.float32),
    }
    if d_out == 1:
        params["w2_row"] = jnp.reshape(w2, (1, h_dim)).astype(jnp.float32)
    else:
        params["w2"] = w2.astype(jnp.float32)
    return params


def reward_regression_forward(x, params, *, block_b: int = 1024):
    """ReLU(x @ w1 + b1) @ w2 + b2 as a single fused Pallas kernel.

    x: (B, D_in). params: output of prepare_params(). Returns (B, D_out) in
    x.dtype.
    """
    B, d_in = x.shape
    assert d_in == params["d_in"]
    h_dim, d_out = params["h"], params["d_out"]

    x_f = x if x.dtype == jnp.float32 else x.astype(jnp.float32)

    tb = _choose_batch_tile(B, block_b)
    grid = (_cdiv(B, tb),)

    w1, b1, b2 = params["w1"], params["b1"], params["b2"]

    # Weights stay VMEM-resident (constant index_map). Single-buffer them only
    # when double buffering would meaningfully eat VMEM (v7x: 64 MiB physical).
    weight_bytes = 4 * (w1.size + b1.size + h_dim + d_out)
    weight_mode = (pl.Buffered(buffer_count=1)
                   if (4 * w1.size) > (4 << 20) else None)

    def const_spec(shape):
        n = len(shape)
        return pl.BlockSpec(shape, lambda *_: (0,) * n, pipeline_mode=weight_mode)

    flops = 2 * B * h_dim * (d_in + d_out)
    bytes_accessed = 4 * (B * d_in + B * d_out) + weight_bytes
    cost = pl.CostEstimate(flops=flops, transcendentals=0,
                           bytes_accessed=bytes_accessed)
    cparams = pltpu.CompilerParams(
        dimension_semantics=("parallel",),
        vmem_limit_bytes=_vmem_limit_bytes(tb, d_in, h_dim, max(d_out, 1),
                                           weight_bytes),
    )

    if d_out == 1:
        # Reward-head fast path.
        return pl.pallas_call(
            _mlp_kernel_dout1,
            out_shape=jax.ShapeDtypeStruct((B, 1), x.dtype),
            grid=grid,
            in_specs=[
                pl.BlockSpec((tb, d_in), lambda i: (i, 0)),         # x tile
                const_spec((d_in, h_dim)),                          # w1
                const_spec((1, h_dim)),                             # b1
                const_spec((1, h_dim)),                             # w2 row
                pl.BlockSpec(memory_space=pltpu.MemorySpace.SMEM),  # b2 scalar
            ],
            out_specs=pl.BlockSpec((tb, 1), lambda i: (i, 0)),
            compiler_params=cparams,
            cost_estimate=cost,
        )(x_f, w1, b1, params["w2_row"], b2)

    # Generic D_out > 1 path (not used by the reward head, kept for completeness).
    return pl.pallas_call(
        _mlp_kernel_wide,
        out_shape=jax.ShapeDtypeStruct((B, d_out), x.dtype),
        grid=grid,
        in_specs=[
            pl.BlockSpec((tb, d_in), lambda i: (i, 0)),
            const_spec((d_in, h_dim)),
            const_spec((1, h_dim)),
            const_spec((h_dim, d_out)),
            const_spec((1, d_out)),
        ],
        out_specs=pl.BlockSpec((tb, d_out), lambda i: (i, 0)),
        compiler_params=cparams,
        cost_estimate=cost,
    )(x_f, w1, b1, params["w2"], b2)


def init_params(key, d_in, h, d_out, dtype=jnp.float32):
    """Deterministic PyTorch-style uniform(-1/sqrt(fan_in), 1/sqrt(fan_in)) init."""
    k1, k2, k3, k4 = jax.random.split(key, 4)
    lim1 = 1.0 / (d_in ** 0.5)
    lim2 = 1.0 / (h ** 0.5)
    w1 = jax.random.uniform(k1, (d_in, h), dtype, -lim1, lim1)
    b1 = jax.random.uniform(k2, (1, h), dtype, -lim1, lim1)
    w2 = jax.random.uniform(k3, (h, d_out), dtype, -lim2, lim2)
    b2 = jax.random.uniform(k4, (1, d_out), dtype, -lim2, lim2)
    return w1, b1, w2, b2


if __name__ == "__main__":
    # Small shapes consistent with the module (reward head: D_out = 1).
    B, D_in, H, D_out = 8, 32, 64, 1

    key = jax.random.PRNGKey(0)
    kx, kp = jax.random.split(key)
    x = jax.random.normal(kx, (B, D_in), jnp.float32)
    w1, b1, w2, b2 = init_params(kp, D_in, H, D_out)
    params = prepare_params(w1, b1, w2, b2)

    out = jax.block_until_ready(reward_regression_forward(x, params))
    assert out.shape == (B, D_out)

    # f32 reference (kernel keeps f32 operands; MXU f32 is multi-pass bf16).
    ref = jnp.maximum(x @ w1 + b1, 0.0) @ w2 + b2
    assert jnp.allclose(out, ref, atol=1e-2, rtol=1e-2), \
        float(jnp.max(jnp.abs(out - ref)))

    print("KERNEL_OK")
</pallas_src>

<mosaic_0001>
module attributes {stable_mosaic.version = 11 : i64} {
  func.func @_mlp_kernel_dout1(%arg0: i32, %arg1: memref<8x32xf32, #tpu.memory_space<vmem>>, %arg2: memref<32x64xf32, #tpu.memory_space<vmem>>, %arg3: memref<1x64xf32, #tpu.memory_space<vmem>>, %arg4: memref<1x64xf32, #tpu.memory_space<vmem>>, %arg5: memref<1x1xf32, #tpu.memory_space<smem>>, %arg6: memref<8x1xf32, #tpu.memory_space<vmem>>) attributes {dimension_semantics = [#tpu.dimension_semantics<parallel>], iteration_bounds = array<i64: 1>, scalar_prefetch = 0 : i64, scratch_operands = 0 : i64, tpu.core_type = #tpu.core_type<tc>, window_params = [{transform_indices = @transform_0, window_bounds = array<i64: 8, 32>}, {pipeline_mode = #tpu.pipeline_mode<synchronous>, transform_indices = @transform_1, window_bounds = array<i64: 32, 64>}, {pipeline_mode = #tpu.pipeline_mode<synchronous>, transform_indices = @transform_2, window_bounds = array<i64: 1, 64>}, {pipeline_mode = #tpu.pipeline_mode<synchronous>, transform_indices = @transform_3, window_bounds = array<i64: 1, 64>}, {transform_indices = @transform_4, window_bounds = array<i64: 1, 1>}, {transform_indices = @transform_5, window_bounds = array<i64: 8, 1>}]} {
    %c0 = arith.constant 0 : index
    %c0_0 = arith.constant 0 : index
    %0 = vector.load %arg1[%c0, %c0_0] : memref<8x32xf32, #tpu.memory_space<vmem>>, vector<8x32xf32>
    %c0_1 = arith.constant 0 : index
    %c0_2 = arith.constant 0 : index
    %1 = vector.load %arg2[%c0_1, %c0_2] : memref<32x64xf32, #tpu.memory_space<vmem>>, vector<32x64xf32>
    %cst = arith.constant dense<0.000000e+00> : vector<8x64xf32>
    %2 = tpu.matmul %0, %1, %cst {dimension_numbers = #tpu.dot_dimension_numbers<[1], [0], [0], [1], [0, 0, 1, 1], [], []>} : vector<8x32xf32>, vector<32x64xf32>, vector<8x64xf32> -> vector<8x64xf32>
    %c0_3 = arith.constant 0 : index
    %c0_4 = arith.constant 0 : index
    %3 = vector.load %arg3[%c0_3, %c0_4] : memref<1x64xf32, #tpu.memory_space<vmem>>, vector<1x64xf32>
    %4 = vector.broadcast %3 : vector<1x64xf32> to vector<8x64xf32>
    %5 = arith.addf %2, %4 : vector<8x64xf32>
    %cst_5 = arith.constant 0.000000e+00 : f32
    %6 = vector.broadcast %cst_5 : f32 to vector<8x64xf32>
    %7 = arith.maximumf %5, %6 : vector<8x64xf32>
    %c0_6 = arith.constant 0 : index
    %c0_7 = arith.constant 0 : index
    %8 = vector.load %arg4[%c0_6, %c0_7] : memref<1x64xf32, #tpu.memory_space<vmem>>, vector<1x64xf32>
    %9 = vector.broadcast %8 : vector<1x64xf32> to vector<8x64xf32>
    %10 = arith.mulf %7, %9 : vector<8x64xf32>
    %cst_8 = arith.constant dense<0.000000e+00> : vector<8xf32>
    %11 = vector.multi_reduction <add>, %10, %cst_8 [1] : vector<8x64xf32> to vector<8xf32>
    %12 = vector.shape_cast %11 : vector<8xf32> to vector<8x1xf32>
    %c0_9 = arith.constant 0 : index
    %c0_10 = arith.constant 0 : index
    %13 = memref.load %arg5[%c0_9, %c0_10] : memref<1x1xf32, #tpu.memory_space<smem>>
    %14 = vector.broadcast %13 : f32 to vector<8x1xf32>
    %15 = arith.addf %12, %14 : vector<8x1xf32>
    %c0_11 = arith.constant 0 : index
    %c0_12 = arith.constant 0 : index
    %16 = vector.load %arg6[%c0_11, %c0_12] : memref<8x1xf32, #tpu.memory_space<vmem>>, vector<8x1xf32>
    tpu.vector_store %arg6[%c0_11, %c0_12], %15 {strides = array<i32>} : memref<8x1xf32, #tpu.memory_space<vmem>>, vector<8x1xf32>,
    return
  }
  func.func @transform_0(%arg0: i32) -> (i32, i32) {
    %c0_i32 = arith.constant 0 : i32
    %c0_i32_0 = arith.constant 0 : i32
    return %arg0, %c0_i32 : i32, i32
  }
  func.func @transform_1(%arg0: i32) -> (i32, i32) {
    %c0_i32 = arith.constant 0 : i32
    %c0_i32_0 = arith.constant 0 : i32
    %c0_i32_1 = arith.constant 0 : i32
    return %c0_i32, %c0_i32_0 : i32, i32
  }
  func.func @transform_2(%arg0: i32) -> (i32, i32) {
    %c0_i32 = arith.constant 0 : i32
    %c0_i32_0 = arith.constant 0 : i32
    %c0_i32_1 = arith.constant 0 : i32
    return %c0_i32, %c0_i32_0 : i32, i32
  }
  func.func @transform_3(%arg0: i32) -> (i32, i32) {
    %c0_i32 = arith.constant 0 : i32
    %c0_i32_0 = arith.constant 0 : i32
    %c0_i32_1 = arith.constant 0 : i32
    return %c0_i32, %c0_i32_0 : i32, i32
  }
  func.func @transform_4(%arg0: i32) -> (i32, i32) {
    %c0_i32 = arith.constant 0 : i32
    %c0_i32_0 = arith.constant 0 : i32
    %c0_i32_1 = arith.constant 0 : i32
    return %c0_i32, %c0_i32_0 : i32, i32
  }
  func.func @transform_5(%arg0: i32) -> (i32, i32) {
    %c0_i32 = arith.constant 0 : i32
    %c0_i32_0 = arith.constant 0 : i32
    return %arg0, %c0_i32 : i32, i32
  }
}

</mosaic_0001>

<bundles_post_ra>
// kernel: tpu_custom_call.1
= control target key start
LH: loop header
LB: loop body
LE: loop exit
PB: predicated region body
PF: predicated region fallthrough
CT: control target
= control target key end

     0   :  { %11 = vsyncpa [#allocation4], 0  ;;  %s216_s0 = inlined_call_operand.hbm [shape: f32[8,32], index: 0, kind: input, shape index: {}]   ;;  %s217_s1 = inlined_call_operand.hbm [shape: f32[32,64], index: 1, kind: input, shape index: {}]   ;;  %s218_s2 = inlined_call_operand.vmem [shape: f32[1,64], index: 2, kind: input, shape index: {}]   ;;  %s219_s3 = inlined_call_operand.vmem [shape: f32[1,64], index: 3, kind: input, shape index: {}]   ;;  %s220_s4 = inlined_call_operand.<no memory space> [shape: f32[1,1], index: 4, kind: input, shape index: {}]   ;;  %s221_s5 = inlined_call_operand.vmem [shape: f32[8,1], index: 5, kind: output, shape index: {}]  }
   0x1   :  { %s18_s20 = sshll.u32 %s216_s0, 4  ;;  %s19_s20 = int_to_ptr.hbm [resolvable:$true] %s18_s20 }
   0x2   :  { %12 = vsyncpa [#allocation6], 0  ;;  %s164_s21 = smov [#allocation3]   ;;  %s28_s25 = sshll.u32 %s217_s1, 4  ;;  %s29_s25 = int_to_ptr.hbm [resolvable:$true] %s28_s25 }
   0x3   :  { %s20_s22 = sshll.u32 %s164_s21, 4  ;;  %s165_s26 = smov [#allocation5]   ;;  %s21_s22 = int_to_ptr.vmem [resolvable:$true] %s20_s22 }
   0x4   :  { %23 = dma.hbm_to_vmem [thread:$0]  %s19_s20, 128, %s21_s22, [#allocation4]  }
   0x5   :  { %s30_s27 = sshll.u32 %s165_s26, 4  ;;  %s166_s28 = smov 128   ;;  %s31_s27 = int_to_ptr.vmem [resolvable:$true] %s30_s27 }
   0x6   :  { %s167_s29 = smov 8  }
   0x7   :  { %36 = dma.hbm_to_vmem [thread:$0]  %s29_s25, 512, %s31_s27, [#allocation6], %s166_s28, %s166_s28, %s167_s29  }
   0x8   :  { %160 = dma.done.wait [#allocation4], 128  }
   0x9   :  { %161 = vsyncadd [#allocation4], 4294967168 }
   0xa   :  { %162 = dma.done.wait [#allocation6], 512  }
   0xb   :  { %163 = vsyncadd [#allocation6], 4294966784  ;;  %v55_v0 = vld [vmem:[#allocation5 + $0x18] sm:$0xff]  ;;  %v54_v1 = vld [vmem:[#allocation5 + $0x10] sm:$0xff]  ;;  %vm60_vm0 = vcmask 261120   ;;  %vm90_vm1 = vcmask 523264   ;;  %v95_v12 = vstv %s220_s4 }
   0xc   :  { %76 = vmatpush.msra.mxu0 %v55_v0  ;;  %v53_v2 = vld [vmem:[#allocation5 + $0x8] sm:$0xff]  ;;  %v52_v3 = vld [vmem:[#allocation5] sm:$0xff]  ;;  %v51_v4 = vld [vmem:[#allocation3] sm:$0xff]  ;;  %vm97_vm2 = vcmask 7168  }
   0xd   :  { %v110_v5 = vld [vmem:[%s218_s2] ss:$0 sm:$0xff] }
   0xe   :  { %77 = vmatpush.msra.mxu0 %v54_v1  ;;  %v111_v8 = vld [vmem:[%s219_s3] ss:$0 sm:$0xff] }
  0x10   :  { %78 = vmatpush.msra.mxu0 %v53_v2 }
  0x12   :  { %79 = vmatpush.msra.mxu0 %v52_v3 }
  0x13   :  { %105 = vmatmul.msk.f32.vlgmr.msra.gmra.mxu0 %vm60_vm0, %v51_v4 }
  0x90   :  { %v81_v6 = vpop.f32.mrf.mxu0 }
  0x91   :  { %v82_v7 = vadd.f32 %v110_v5, %v81_v6 }
  0x93   :  { %v84_v9 = vmax.f32 %v82_v7, 0.0 }
  0x95   :  { %v89_v10 = vmul.f32 %v111_v8, %v84_v9 }
  0x97   :  { %v91_v11 = vsel %vm90_vm1, %v89_v10, 0.0 }
  0x98   :  { %92 = vadd.xlane.f32.xlu0 %v91_v11 }
 0x10b   :  { %v93_v13 = vpop.xlane.xlu0 %92 }
 0x10c   :  { %v96_v14 = vadd.f32 %v95_v12, %v93_v13 }
 0x10e   :  { %98 = vst.msk [vmem:[%s221_s5] sm:$0xff] %vm97_vm2, %v96_v14 }
 0x10f   :  { %103 = vsyncpa [#allocation4], 1 }
 0x110   :  { %104 = vsyncpa [#allocation6], 1 }

</bundles_post_ra>
